<compile_context>
chip_gen: v7x
topology: tpu7x:2x2x1
jax: 0.10.0
libtpu: 0.0.40
codegen_flags: <defaults>
</compile_context>

<pallas_src>
import functools

import jax
import jax.numpy as jnp
from jax import lax
from jax.experimental import pallas as pl
from jax.experimental.pallas import tpu as pltpu


def _round_up(x, m):
    return ((x + m - 1) // m) * m


# ---------------------------------------------------------------------------
# Path A: table resident in VMEM, gather via one-hot matmul on the MXU.
# ---------------------------------------------------------------------------
def _resident_onehot_kernel(tok_ref, table_ref, out_ref):
    """out[r, :] = table[tok[r], :] via a (TM, V) one-hot on the MXU.

    tok_ref:   (TM, 1) int32 VMEM block of clamped token ids
    table_ref: (V, D) VMEM block, resident across the whole grid
    out_ref:   (TM, D) VMEM output block
    """
    tm = out_ref.shape[0]
    v = table_ref.shape[0]
    ids_col = tok_ref[...]                                  # (TM, 1)
    cols = lax.broadcasted_iota(jnp.int32, (tm, v), 1)      # (TM, V)
    onehot = (ids_col == cols).astype(table_ref.dtype)      # exactly one 1 per row
    out_ref[...] = jnp.dot(
        onehot, table_ref[...], preferred_element_type=jnp.float32
    ).astype(out_ref.dtype)


# ---------------------------------------------------------------------------
# Path B: table stays in HBM, per-row gather DMAs into the output block.
# ---------------------------------------------------------------------------
def _hbm_gather_kernel(tok_ref, table_hbm, out_ref, copy_sem):
    """Gather TM embedding rows from the HBM table into the output block.

    tok_ref:   (N_pad,) int32 in SMEM (scalar prefetch)
    table_hbm: (V, D) ref left in HBM (memory_space=pl.ANY, no auto-DMA)
    out_ref:   (TM, D) VMEM output block
    copy_sem:  single DMA semaphore shared by all row copies of this step
    """
    tm = out_ref.shape[0]
    base = pl.program_id(0) * tm

    def issue(r, carry):
        t = tok_ref[base + r]
        pltpu.make_async_copy(
            table_hbm.at[pl.ds(t, 1), :],
            out_ref.at[pl.ds(r, 1), :],
            copy_sem,
        ).start()
        return carry

    # Issue all TM row DMAs first; they run concurrently on one semaphore.
    lax.fori_loop(0, tm, issue, 0, unroll=8)

    def drain(r, carry):
        # wait() only consumes the descriptor's byte count, which is identical
        # for every (1, D) row copy, so use a constant descriptor: no SMEM id
        # re-reads on the scalar path, no sld-after-wait penalty.
        pltpu.make_async_copy(
            table_hbm.at[pl.ds(0, 1), :],
            out_ref.at[pl.ds(0, 1), :],
            copy_sem,
        ).wait()
        return carry

    lax.fori_loop(0, tm, drain, 0, unroll=8)


@functools.partial(jax.jit, static_argnames=("block_rows",))
def embedding_forward(tokens, table, *, block_rows=None):
    """tokens: (B, S) integer ids, table: (V, D) -> (B, S, D) embeddings."""
    B, S = tokens.shape
    V, D = table.shape
    N = B * S

    dtype_bytes = jnp.dtype(table.dtype).itemsize
    row_bytes = D * dtype_bytes
    table_bytes = V * row_bytes

    # Clamp ids so every DMA / one-hot stays in bounds (PyTorch would raise).
    tok_flat = jnp.clip(tokens.reshape(-1).astype(jnp.int32), 0, V - 1)

    use_resident = (
        jnp.issubdtype(table.dtype, jnp.floating)
        and V <= 2048
        and table_bytes <= (8 << 20)
    )

    if use_resident:
        # ---- Path A: VMEM-resident table + one-hot MXU gather -------------
        tm = 256 if block_rows is None else block_rows
        tm = max(8, min(_round_up(tm, 8), _round_up(N, 8)))
        n_pad = _round_up(N, tm)
        tok_col = jnp.pad(tok_flat, (0, n_pad - N)).reshape(n_pad, 1)

        vmem_limit = int(
            min(48 << 20,
                max(32 << 20, 2 * table_bytes + 2 * tm * row_bytes + (4 << 20)))
        )

        out_flat = pl.pallas_call(
            _resident_onehot_kernel,
            out_shape=jax.ShapeDtypeStruct((n_pad, D), table.dtype),
            grid_spec=pltpu.PrefetchScalarGridSpec(
                num_scalar_prefetch=0,
                grid=(n_pad // tm,),
                in_specs=[
                    pl.BlockSpec((tm, 1), lambda i: (i, 0)),    # ids per block
                    pl.BlockSpec((V, D), lambda i: (0, 0)),     # resident table
                ],
                out_specs=pl.BlockSpec((tm, D), lambda i: (i, 0)),
            ),
            compiler_params=pltpu.CompilerParams(
                dimension_semantics=("parallel",),
                vmem_limit_bytes=vmem_limit,
            ),
        )(tok_col, table)
    else:
        # ---- Path B: table in HBM, per-row gather DMAs ---------------------
        # Target 512-row blocks; cap so 2*TM*row_bytes <= ~16 MiB (output
        # double buffer) which fits v7x's 64 MiB VMEM with headroom.
        tm_cap = max(8, ((16 << 20) // (2 * row_bytes)) // 8 * 8)
        tm = 512 if block_rows is None else block_rows
        tm = max(8, min(_round_up(tm, 8), 1024, tm_cap, _round_up(N, 8)))
        n_pad = _round_up(N, tm)
        tok_pad = jnp.pad(tok_flat, (0, n_pad - N))

        vmem_limit = int(
            min(48 << 20, max(32 << 20, 2 * tm * row_bytes + (4 << 20)))
        )

        out_flat = pl.pallas_call(
            _hbm_gather_kernel,
            out_shape=jax.ShapeDtypeStruct((n_pad, D), table.dtype),
            grid_spec=pltpu.PrefetchScalarGridSpec(
                num_scalar_prefetch=1,                          # ids -> SMEM
                grid=(n_pad // tm,),
                in_specs=[pl.BlockSpec(memory_space=pl.ANY)],   # table stays in HBM
                out_specs=pl.BlockSpec((tm, D), lambda i, tok: (i, 0)),
                scratch_shapes=[pltpu.SemaphoreType.DMA(())],
            ),
            compiler_params=pltpu.CompilerParams(
                dimension_semantics=("parallel",),
                vmem_limit_bytes=vmem_limit,
            ),
        )(tok_pad, table)

    return out_flat[:N].reshape(B, S, D)


if __name__ == "__main__":
    key = jax.random.PRNGKey(0)
    k1, k2, k3, k4 = jax.random.split(key, 4)

    # --- Test 1: small table -> resident-table one-hot MXU path (bit-exact
    #             for bf16: single non-zero product, f32 accumulation).
    B, S, V, D = 2, 8, 256, 128
    tokens = jax.random.randint(k1, (B, S), 0, V, dtype=jnp.int32)
    table = (jax.random.normal(k2, (V, D), dtype=jnp.float32)
             / jnp.sqrt(D)).astype(jnp.bfloat16)
    out = jax.block_until_ready(embedding_forward(tokens, table))
    ref = jnp.take(table, tokens.reshape(-1), axis=0).reshape(B, S, D)
    assert out.shape == (B, S, D) and out.dtype == table.dtype
    assert jnp.allclose(out.astype(jnp.float32), ref.astype(jnp.float32),
                        atol=1e-6, rtol=1e-6)

    # --- Test 2: larger vocab -> HBM row-gather DMA path (exact byte copy).
    B2, S2, V2, D2 = 2, 8, 4096, 128
    tokens2 = jax.random.randint(k3, (B2, S2), 0, V2, dtype=jnp.int32)
    table2 = jax.random.normal(k4, (V2, D2), dtype=jnp.float32) / jnp.sqrt(D2)
    out2 = jax.block_until_ready(embedding_forward(tokens2, table2))
    ref2 = jnp.take(table2, tokens2.reshape(-1), axis=0).reshape(B2, S2, D2)
    assert out2.shape == (B2, S2, D2)
    assert jnp.allclose(out2, ref2, atol=1e-6, rtol=1e-6)

    print("KERNEL_OK")
</pallas_src>

<mosaic_0001>
module attributes {stable_mosaic.version = 11 : i64} {
  func.func @_resident_onehot_kernel(%arg0: i32, %arg1: memref<16x1xi32, #tpu.memory_space<vmem>>, %arg2: memref<256x128xbf16, #tpu.memory_space<vmem>>, %arg3: memref<16x128xbf16, #tpu.memory_space<vmem>>) attributes {dimension_semantics = [#tpu.dimension_semantics<parallel>], iteration_bounds = array<i64: 1>, scalar_prefetch = 0 : i64, scratch_operands = 0 : i64, tpu.core_type = #tpu.core_type<tc>, window_params = [{transform_indices = @transform_0, window_bounds = array<i64: 16, 1>}, {pipeline_mode = #tpu.pipeline_mode<synchronous>, transform_indices = @transform_1, window_bounds = array<i64: 256, 128>}, {transform_indices = @transform_2, window_bounds = array<i64: 16, 128>}]} {
    %c0 = arith.constant 0 : index
    %c0_0 = arith.constant 0 : index
    %0 = vector.load %arg1[%c0, %c0_0] : memref<16x1xi32, #tpu.memory_space<vmem>>, vector<16x1xi32>
    %1 = tpu.iota {dimensions = array<i32: 1>} : vector<16x256xi32>
    %2 = vector.broadcast %0 : vector<16x1xi32> to vector<16x256xi32>
    %3 = arith.cmpi eq, %2, %1 : vector<16x256xi32>
    %4 = arith.extui %3 : vector<16x256xi1> to vector<16x256xi32>
    %5 = arith.sitofp %4 : vector<16x256xi32> to vector<16x256xf32>
    %6 = arith.truncf %5 : vector<16x256xf32> to vector<16x256xbf16>
    %c0_1 = arith.constant 0 : index
    %c0_2 = arith.constant 0 : index
    %7 = vector.load %arg2[%c0_1, %c0_2] : memref<256x128xbf16, #tpu.memory_space<vmem>>, vector<256x128xbf16>
    %cst = arith.constant dense<0.000000e+00> : vector<16x128xf32>
    %8 = tpu.matmul %6, %7, %cst {dimension_numbers = #tpu.dot_dimension_numbers<[1], [0], [0], [1], [0, 0, 1, 1], [], []>} : vector<16x256xbf16>, vector<256x128xbf16>, vector<16x128xf32> -> vector<16x128xf32>
    %9 = arith.truncf %8 : vector<16x128xf32> to vector<16x128xbf16>
    %c0_3 = arith.constant 0 : index
    %c0_4 = arith.constant 0 : index
    %10 = vector.load %arg3[%c0_3, %c0_4] : memref<16x128xbf16, #tpu.memory_space<vmem>>, vector<16x128xbf16>
    tpu.vector_store %arg3[%c0_3, %c0_4], %9 {strides = array<i32>} : memref<16x128xbf16, #tpu.memory_space<vmem>>, vector<16x128xbf16>,
    return
  }
  func.func @transform_0(%arg0: i32) -> (i32, i32) {
    %c0_i32 = arith.constant 0 : i32
    %c0_i32_0 = arith.constant 0 : i32
    return %arg0, %c0_i32 : i32, i32
  }
  func.func @transform_1(%arg0: i32) -> (i32, i32) {
    %c0_i32 = arith.constant 0 : i32
    %c0_i32_0 = arith.constant 0 : i32
    %c0_i32_1 = arith.constant 0 : i32
    return %c0_i32, %c0_i32_0 : i32, i32
  }
  func.func @transform_2(%arg0: i32) -> (i32, i32) {
    %c0_i32 = arith.constant 0 : i32
    %c0_i32_0 = arith.constant 0 : i32
    return %arg0, %c0_i32 : i32, i32
  }
}

</mosaic_0001>

<bundles_post_ra>
// kernel: embedding_forward.1
= control target key start
LH: loop header
LB: loop body
LE: loop exit
PB: predicated region body
PF: predicated region fallthrough
CT: control target
= control target key end

     0   :  { %7 = vsyncpa [#allocation3], 0  ;;  %s431_s0 = inlined_call_operand.vmem [shape: s32[16,1], index: 0, kind: input, shape index: {}]   ;;  %s432_s1 = inlined_call_operand.hbm [shape: bf16[256,128], index: 1, kind: input, shape index: {}]   ;;  %s433_s2 = inlined_call_operand.hbm [shape: bf16[16,128], index: 2, kind: output, shape index: {}]  }
   0x1   :  { %8 = vsyncpa [#allocation4], 0  ;;  %s374_s9 = smov [#allocation2]   ;;  %s326_s13 = scalar_lea.hbm %s432_s1, 2048 }
   0x2   :  { %s16_s10 = sshll.u32 %s374_s9, 4  ;;  %p327_p0 = scmp.ne.s32.totalorder %s432_s1, %s326_s13  ;;  %s17_s10 = int_to_ptr.vmem [resolvable:$true] %s16_s10 }
   0x3   :  { %p330_p1 = scmp.lt.u32.totalorder %s326_s13, %s432_s1 }
   0x5   :  { %p332_p2 = pnand %p330_p1, %p327_p0 }
   0x7   :  { %335 = shalt.err (!%p332_p2)
}
   0x8   :  { %s336_s18 = scalar_lea.vmem %s17_s10, 2048  ;;  %p341_p4 = scmp.lt.s32.totalorder %s17_s10, %s17_s10 }
   0x9   :  { %p337_p3 = scmp.ne.s32.totalorder %s17_s10, %s336_s18  ;;  %p342_p5 = scmp.lt.s32.totalorder %s336_s18, %s336_s18 }
   0xb   :  { %p343_p6 = por %p342_p5, %p341_p4 }
   0xd   :  { %p344_p7 = pnand %p343_p6, %p337_p3 }
   0xf   :  { %347 = shalt.err (!%p344_p7)
}
  0x10   :  { %s375_s19 = smov 64   ;;  %s376_s20 = smov 4  }
  0x11   :  { %22 = dma.hbm_to_vmem [thread:$0]  %s432_s1, 2048, %s17_s10, [#allocation3], %s375_s19, %s375_s19, %s376_s20  }
  0x12   :  { %370 = dma.done.wait [#allocation3], 2048  }
  0x13   :  { %371 = vsyncadd [#allocation3], 4294965248  ;;  %v377_v0 = vmov 0   ;;  %v27_v1 = vld [vmem:[%s431_s0] sm:$0xff]  ;;  %v28_v2 = vld [vmem:[%s431_s0 + $0x8] sm:$0xff]  ;;  %v29_v19 = vlaneseq  ;;  %s379_s0 = smov [#allocation5]  }
  0x14   :  { %309 = vset.pattern.permute.xlu0 %v377_v0  ;;  %v310_v3 = vld [vmem:[#allocation2 + $0x40] sm:$0xff]   ;;  %v312_v5 = vld [vmem:[#allocation2 + $0x48] sm:$0xff]   ;;  %v314_v7 = vld [vmem:[#allocation2 + $0x50] sm:$0xff]   ;;  %v378_v24 = vmov 1.0|1.0   ;;  %s236_s1 = sshll.u32 %s379_s0, 4  ;;  %s237_s1 = int_to_ptr.vmem [resolvable:$true] %s236_s1 }
  0x15   :  { %33 = vperm.xlu0 %309, %v27_v1   ;;  %v311_v4 = vld [vmem:[#allocation2] sm:$0xff]   ;;  %281 = vmatprep.subr.bf16.mxu0 %v310_v3  ;;  %v313_v6 = vld [vmem:[#allocation2 + $0x8] sm:$0xff]   ;;  %v315_v8 = vld [vmem:[#allocation2 + $0x10] sm:$0xff]   ;;  %v30_v20 = vand.u32 127, %v29_v19  ;;  %s348_s27 = scalar_lea.vmem %s237_s1, 128  ;;  %p353_p9 = scmp.lt.s32.totalorder %s237_s1, %s237_s1 }
  0x16   :  { %282 = vmatpush3.bf16.msra.mxu0 %v311_v4  ;;  %v316_v9 = vld [vmem:[#allocation2 + $0x58] sm:$0xff]   ;;  %v318_v11 = vld [vmem:[#allocation2 + $0x60] sm:$0xff]   ;;  %v320_v13 = vld [vmem:[#allocation2 + $0x68] sm:$0xff]   ;;  %p349_p8 = scmp.ne.s32.totalorder %s237_s1, %s348_s27  ;;  %p354_p10 = scmp.lt.s32.totalorder %s348_s27, %s348_s27 }
  0x17   :  { %283 = vmatprep.subr.bf16.mxu0 %v312_v5  ;;  %v317_v10 = vld [vmem:[#allocation2 + $0x18] sm:$0xff]   ;;  %v319_v12 = vld [vmem:[#allocation2 + $0x20] sm:$0xff]   ;;  %v321_v14 = vld [vmem:[#allocation2 + $0x28] sm:$0xff]   ;;  %v31_v22 = vadd.s32 128, %v30_v20 }
  0x18   :  { %v322_v15 = vld [vmem:[#allocation2 + $0x70] sm:$0xff]   ;;  %v324_v17 = vld [vmem:[#allocation2 + $0x78] sm:$0xff]   ;;  %p355_p11 = por %p354_p10, %p353_p9 }
  0x19   :  { %36 = vperm.xlu0 %309, %v28_v2   ;;  %v323_v16 = vld [vmem:[#allocation2 + $0x30] sm:$0xff]   ;;  %v325_v18 = vld [vmem:[#allocation2 + $0x38] sm:$0xff]  }
  0x1a   :  { %284 = vmatpush3.bf16.msra.mxu0 %v313_v6  ;;  %p356_p12 = pnand %p355_p11, %p349_p8 }
  0x1b   :  { %285 = vmatprep.subr.bf16.mxu0 %v314_v7 }
  0x1e   :  { %286 = vmatpush3.bf16.msra.mxu0 %v315_v8 }
  0x1f   :  { %287 = vmatprep.subr.bf16.mxu0 %v316_v9 }
  0x22   :  { %288 = vmatpush3.bf16.msra.mxu0 %v317_v10 }
  0x23   :  { %289 = vmatprep.subr.bf16.mxu0 %v318_v11 }
  0x26   :  { %290 = vmatpush3.bf16.msra.mxu0 %v319_v12 }
  0x27   :  { %291 = vmatprep.subr.bf16.mxu0 %v320_v13 }
  0x2a   :  { %292 = vmatpush3.bf16.msra.mxu0 %v321_v14 }
  0x2b   :  { %293 = vmatprep.subr.bf16.mxu0 %v322_v15 }
  0x2e   :  { %294 = vmatpush3.bf16.msra.mxu0 %v323_v16 }
  0x2f   :  { %295 = vmatprep.subr.bf16.mxu0 %v324_v17 }
  0x32   :  { %296 = vmatpush3.bf16.msra.mxu0 %v325_v18 }
  0x94   :  { %v34_v21 = vpop.permute.xlu0 %33 }
  0x95   :  { %vm38_vm0 = vcmp.eq.s32.totalorder %v34_v21, %v30_v20  ;;  %vm39_vm4 = vcmp.eq.s32.totalorder %v34_v21, %v31_v22 }
  0x98   :  { %v37_v23 = vpop.permute.xlu0 %36 }
  0x99   :  { %vm40_vm1 = vcmp.eq.s32.totalorder %v37_v23, %v30_v20  ;;  %vm41_vm2 = vcmp.eq.s32.totalorder %v37_v23, %v31_v22 }
  0x9a   :  { %vm270_vm3 = vmpackc.low %vm40_vm1, %vm38_vm0 }
  0x9b   :  { %vm268_vm5 = vmpackc.low %vm41_vm2, %vm39_vm4 }
  0x9c   :  { %269 = vmatprep.mubr.msk.bf16.mxu0 %vm268_vm5, %v378_v24 }
  0x9d   :  { %271 = vmatmul.mubr.msk.bf16.vlgmr.msra.gmra.mrb[0].mxu0 %vm270_vm3, %v378_v24 }
 0x170   :  { %v297_v25 = vpop.f32.mrb[0].mxu0 }
 0x171   :  { %v298_v26 = vpop.f32.mrb[1].mxu0 }
 0x172   :  { %v299_v27 = vadd.f32 %v298_v26, %v297_v25  ;;  %v300_v28 = vpop.f32.mrb[2].mxu0 }
 0x173   :  { %v301_v29 = vpop.f32.mrb[3].mxu0 }
 0x174   :  { %v302_v30 = vadd.f32 %v301_v29, %v300_v28 }
 0x176   :  { %v279_v31 = vpack.c.bf16 %v302_v30, %v299_v27 }
 0x178   :  { %280 = vst [vmem:[#allocation5] sm:$0xff] %v279_v31  }
 0x179   :  { %359 = shalt.err (!%p356_p12)
}
 0x17a   :  { %s360_s30 = scalar_lea.hbm %s433_s2, 128 }
 0x17b   :  { %p361_p13 = scmp.ne.s32.totalorder %s433_s2, %s360_s30  ;;  %p364_p0 = scmp.lt.u32.totalorder %s360_s30, %s433_s2 }
 0x17d   :  { %p366_p1 = pnand %p364_p0, %p361_p13 }
 0x17f   :  { %369 = shalt.err (!%p366_p1)
}
 0x180   :  { %242 = dma.vmem_to_hbm [thread:$0]  %s237_s1, 128, %s433_s2, [#allocation4], %s375_s19, %s375_s19, %s376_s20  }
 0x181   :  { %372 = dma.done.wait [#allocation4], 128  }
 0x182   :  { %373 = vsyncadd [#allocation4], 4294967168 }
 0x183   :  { %246 = vsyncpa [#allocation3], 1 }
 0x184   :  { %247 = vsyncpa [#allocation4], 1 }

</bundles_post_ra>
